<compile_context>
chip_gen: v5e
topology: v5e:2x2
jax: 0.10.0
libtpu: 0.0.40
codegen_flags: <defaults>
</compile_context>

<pallas_src>
import jax
import jax.numpy as jnp
from jax.experimental import pallas as pl
from jax.experimental.pallas import tpu as pltpu

BN_EPS = 1e-5
LANE = 128
SUBLANE = 8


def _mlp_kernel(x_ref, w1_ref, w2_ref, w3_ref, wo_ref,
                b1_ref, b2_ref, b3_ref, bo_ref, out_ref):
    # All matmuls run in bf16 on the MXU; bias-add / ReLU stay in the f32 accumulator.
    x = x_ref[...].astype(jnp.bfloat16)

    # layer_1 (+ folded batchnorm1) -> relu
    h = jnp.dot(x, w1_ref[...], preferred_element_type=jnp.float32) + b1_ref[...]
    h = jnp.maximum(h, 0.0)
    # layer_2 (+ folded batchnorm2) -> relu -> dropout(eval: identity)
    h = jnp.dot(h.astype(jnp.bfloat16), w2_ref[...],
                preferred_element_type=jnp.float32) + b2_ref[...]
    h = jnp.maximum(h, 0.0)
    # layer_3 (+ folded batchnorm3, lane-padded 64->128) -> relu -> dropout(eval: identity)
    h = jnp.dot(h.astype(jnp.bfloat16), w3_ref[...],
                preferred_element_type=jnp.float32) + b3_ref[...]
    h = jnp.maximum(h, 0.0)
    # layer_out (lane-padded output width)
    out_ref[...] = jnp.dot(h.astype(jnp.bfloat16), wo_ref[...],
                           preferred_element_type=jnp.float32) + bo_ref[...]


def _fold_bn(w, b, g, be, m, v):
    """Fold eval-mode BatchNorm1d into the preceding Linear (in f32)."""
    s = g * jax.lax.rsqrt(v + BN_EPS)     # (1, dout)
    return w * s, (b - m) * s + be


def _round_up(n, m):
    return m * pl.cdiv(n, m)


def gesture_classifier_forward(x, params, *, block_b=512):
    """x: (B, num_feature) float32. params: dict (see init_params). Eval-mode forward."""
    B, F = x.shape
    num_class = params["wo"].shape[1]
    h2 = params["w2"].shape[1]
    h3 = params["w3"].shape[1]

    # ---- fold eval-mode BatchNorm into the preceding Linear layers (f32) ----
    w1, b1 = _fold_bn(params["w1"], params["b1"], params["g1"], params["be1"],
                      params["m1"], params["v1"])
    w2, b2 = _fold_bn(params["w2"], params["b2"], params["g2"], params["be2"],
                      params["m2"], params["v2"])
    w3, b3 = _fold_bn(params["w3"], params["b3"], params["g3"], params["be3"],
                      params["m3"], params["v3"])

    # ---- lane-dense padding: layer-3 width 64 -> 128, output width -> multiple of 128 ----
    h3p = _round_up(h3, LANE)
    c_pad = _round_up(num_class, LANE)
    w3p = jnp.zeros((h2, h3p), jnp.float32).at[:, :h3].set(w3)
    b3p = jnp.zeros((1, h3p), jnp.float32).at[:, :h3].set(b3)
    wop = jnp.zeros((h3p, c_pad), jnp.float32).at[:h3, :num_class].set(params["wo"])
    bop = jnp.zeros((1, c_pad), jnp.float32).at[:, :num_class].set(params["bo"])

    # ---- cast weights to bf16 (after f32 BN fold); biases stay f32 ----
    w1b = w1.astype(jnp.bfloat16)
    w2b = w2.astype(jnp.bfloat16)
    w3b = w3p.astype(jnp.bfloat16)
    wob = wop.astype(jnp.bfloat16)

    # ---- batch tiling: clamp to actual batch, >=2 grid steps when possible ----
    b8 = _round_up(max(B, 1), SUBLANE)                      # minimal sublane-aligned batch
    tb = max(SUBLANE, (min(block_b, b8) // SUBLANE) * SUBLANE)
    if b8 >= 2 * SUBLANE and pl.cdiv(b8, tb) < 2:
        tb = max(SUBLANE, ((b8 // 2) // SUBLANE) * SUBLANE)  # split over both v7x TCs
    b_pad = tb * pl.cdiv(b8, tb)
    if b_pad != B:
        x = jnp.zeros((b_pad, F), x.dtype).at[:B].set(x)

    def resident(shape):
        # Constant index map => block stays VMEM-resident across grid steps (DMA'd once).
        return pl.BlockSpec(shape, lambda i: (0, 0))

    out = pl.pallas_call(
        _mlp_kernel,
        out_shape=jax.ShapeDtypeStruct((b_pad, c_pad), jnp.float32),
        grid=(b_pad // tb,),
        in_specs=[
            pl.BlockSpec((tb, F), lambda i: (i, 0)),   # x: streamed per batch tile
            resident(w1b.shape),
            resident(w2b.shape),
            resident(w3b.shape),
            resident(wob.shape),
            resident(b1.shape),
            resident(b2.shape),
            resident(b3p.shape),
            resident(bop.shape),
        ],
        out_specs=pl.BlockSpec((tb, c_pad), lambda i: (i, 0)),
        compiler_params=pltpu.CompilerParams(
            dimension_semantics=("parallel",),
        ),
    )(x, w1b, w2b, w3b, wob, b1, b2, b3p, bop)

    return out[:B, :num_class]


def init_params(key, num_feature, num_class):
    """Deterministic synthetic parameters (PyTorch nn.Linear weights transposed to (in, out))."""
    dims = [(num_feature, 512), (512, 128), (128, 64), (64, num_class)]
    keys = jax.random.split(key, 16)
    p = {}

    names = ["1", "2", "3", "o"]
    for i, (din, dout) in enumerate(dims):
        p[f"w{names[i]}"] = jax.random.normal(keys[2 * i], (din, dout), jnp.float32) * 0.02
        p[f"b{names[i]}"] = jax.random.normal(keys[2 * i + 1], (1, dout), jnp.float32) * 0.01

    # BatchNorm1d params (gamma, beta, running_mean, running_var) for the 3 hidden layers
    bn_dims = [512, 128, 64]
    for i, d in enumerate(bn_dims):
        kb = jax.random.split(keys[8 + i], 4)
        p[f"g{i + 1}"] = 1.0 + 0.1 * jax.random.normal(kb[0], (1, d), jnp.float32)
        p[f"be{i + 1}"] = 0.1 * jax.random.normal(kb[1], (1, d), jnp.float32)
        p[f"m{i + 1}"] = 0.05 * jax.random.normal(kb[2], (1, d), jnp.float32)
        p[f"v{i + 1}"] = 1.0 + 0.1 * jnp.abs(jax.random.normal(kb[3], (1, d), jnp.float32))
    return p


def reference_forward(x, p):
    """Pure-JAX f32 reference of the same eval-mode forward pass (unfused BN)."""
    def bn(h, g, be, m, v):
        return (h - m) * jax.lax.rsqrt(v + BN_EPS) * g + be

    h = x @ p["w1"] + p["b1"]
    h = jnp.maximum(bn(h, p["g1"], p["be1"], p["m1"], p["v1"]), 0.0)
    h = h @ p["w2"] + p["b2"]
    h = jnp.maximum(bn(h, p["g2"], p["be2"], p["m2"], p["v2"]), 0.0)
    h = h @ p["w3"] + p["b3"]
    h = jnp.maximum(bn(h, p["g3"], p["be3"], p["m3"], p["v3"]), 0.0)
    return h @ p["wo"] + p["bo"]


if __name__ == "__main__":
    key = jax.random.PRNGKey(0)
    k_x, k_x2, k_p = jax.random.split(key, 3)

    num_feature = 32
    num_class = 8
    params = init_params(k_p, num_feature, num_class)

    # bf16 matmuls => relaxed tolerance vs the f32 reference.
    ATOL = RTOL = 2e-2

    # Case 1: tiny batch (single 8-row tile, no wasteful padding to 128).
    batch = 8
    x = jax.random.normal(k_x, (batch, num_feature), jnp.float32)
    out = jax.block_until_ready(gesture_classifier_forward(x, params))
    ref = reference_forward(x, params)
    assert out.shape == (batch, num_class)
    assert jnp.allclose(out, ref, atol=ATOL, rtol=RTOL), "Pallas mismatch (batch=8)"

    # Case 2: batch not a multiple of 8 and large enough to exercise >=2 grid steps.
    batch2 = 20
    x2 = jax.random.normal(k_x2, (batch2, num_feature), jnp.float32)
    out2 = jax.block_until_ready(gesture_classifier_forward(x2, params))
    ref2 = reference_forward(x2, params)
    assert out2.shape == (batch2, num_class)
    assert jnp.allclose(out2, ref2, atol=ATOL, rtol=RTOL), "Pallas mismatch (batch=20)"

    print("KERNEL_OK")
</pallas_src>

<mosaic_0001>
module attributes {stable_mosaic.version = 11 : i64} {
  func.func @_mlp_kernel(%arg0: i32, %arg1: memref<8x32xf32, #tpu.memory_space<vmem>>, %arg2: memref<32x512xbf16, #tpu.memory_space<vmem>>, %arg3: memref<512x128xbf16, #tpu.memory_space<vmem>>, %arg4: memref<128x128xbf16, #tpu.memory_space<vmem>>, %arg5: memref<128x128xbf16, #tpu.memory_space<vmem>>, %arg6: memref<1x512xf32, #tpu.memory_space<vmem>>, %arg7: memref<1x128xf32, #tpu.memory_space<vmem>>, %arg8: memref<1x128xf32, #tpu.memory_space<vmem>>, %arg9: memref<1x128xf32, #tpu.memory_space<vmem>>, %arg10: memref<8x128xf32, #tpu.memory_space<vmem>>) attributes {dimension_semantics = [#tpu.dimension_semantics<parallel>], iteration_bounds = array<i64: 1>, scalar_prefetch = 0 : i64, scratch_operands = 0 : i64, tpu.core_type = #tpu.core_type<tc>, window_params = [{transform_indices = @transform_0, window_bounds = array<i64: 8, 32>}, {pipeline_mode = #tpu.pipeline_mode<synchronous>, transform_indices = @transform_1, window_bounds = array<i64: 32, 512>}, {pipeline_mode = #tpu.pipeline_mode<synchronous>, transform_indices = @transform_2, window_bounds = array<i64: 512, 128>}, {pipeline_mode = #tpu.pipeline_mode<synchronous>, transform_indices = @transform_3, window_bounds = array<i64: 128, 128>}, {pipeline_mode = #tpu.pipeline_mode<synchronous>, transform_indices = @transform_4, window_bounds = array<i64: 128, 128>}, {pipeline_mode = #tpu.pipeline_mode<synchronous>, transform_indices = @transform_5, window_bounds = array<i64: 1, 512>}, {pipeline_mode = #tpu.pipeline_mode<synchronous>, transform_indices = @transform_6, window_bounds = array<i64: 1, 128>}, {pipeline_mode = #tpu.pipeline_mode<synchronous>, transform_indices = @transform_7, window_bounds = array<i64: 1, 128>}, {pipeline_mode = #tpu.pipeline_mode<synchronous>, transform_indices = @transform_8, window_bounds = array<i64: 1, 128>}, {transform_indices = @transform_9, window_bounds = array<i64: 8, 128>}]} {
    %c0 = arith.constant 0 : index
    %c0_0 = arith.constant 0 : index
    %0 = vector.load %arg1[%c0, %c0_0] : memref<8x32xf32, #tpu.memory_space<vmem>>, vector<8x32xf32>
    %1 = arith.truncf %0 : vector<8x32xf32> to vector<8x32xbf16>
    %c0_1 = arith.constant 0 : index
    %c0_2 = arith.constant 0 : index
    %2 = vector.load %arg2[%c0_1, %c0_2] : memref<32x512xbf16, #tpu.memory_space<vmem>>, vector<32x512xbf16>
    %cst = arith.constant dense<0.000000e+00> : vector<8x512xf32>
    %3 = tpu.matmul %1, %2, %cst {dimension_numbers = #tpu.dot_dimension_numbers<[1], [0], [0], [1], [0, 0, 1, 1], [], []>} : vector<8x32xbf16>, vector<32x512xbf16>, vector<8x512xf32> -> vector<8x512xf32>
    %c0_3 = arith.constant 0 : index
    %c0_4 = arith.constant 0 : index
    %4 = vector.load %arg6[%c0_3, %c0_4] : memref<1x512xf32, #tpu.memory_space<vmem>>, vector<1x512xf32>
    %5 = vector.broadcast %4 : vector<1x512xf32> to vector<8x512xf32>
    %6 = arith.addf %3, %5 : vector<8x512xf32>
    %cst_5 = arith.constant 0.000000e+00 : f32
    %7 = vector.broadcast %cst_5 : f32 to vector<8x512xf32>
    %8 = arith.maximumf %6, %7 : vector<8x512xf32>
    %9 = arith.truncf %8 : vector<8x512xf32> to vector<8x512xbf16>
    %c0_6 = arith.constant 0 : index
    %c0_7 = arith.constant 0 : index
    %10 = vector.load %arg3[%c0_6, %c0_7] : memref<512x128xbf16, #tpu.memory_space<vmem>>, vector<512x128xbf16>
    %cst_8 = arith.constant dense<0.000000e+00> : vector<8x128xf32>
    %11 = tpu.matmul %9, %10, %cst_8 {dimension_numbers = #tpu.dot_dimension_numbers<[1], [0], [0], [1], [0, 0, 1, 1], [], []>} : vector<8x512xbf16>, vector<512x128xbf16>, vector<8x128xf32> -> vector<8x128xf32>
    %c0_9 = arith.constant 0 : index
    %c0_10 = arith.constant 0 : index
    %12 = vector.load %arg7[%c0_9, %c0_10] : memref<1x128xf32, #tpu.memory_space<vmem>>, vector<1x128xf32>
    %13 = vector.broadcast %12 : vector<1x128xf32> to vector<8x128xf32>
    %14 = arith.addf %11, %13 : vector<8x128xf32>
    %cst_11 = arith.constant 0.000000e+00 : f32
    %15 = vector.broadcast %cst_11 : f32 to vector<8x128xf32>
    %16 = arith.maximumf %14, %15 : vector<8x128xf32>
    %17 = arith.truncf %16 : vector<8x128xf32> to vector<8x128xbf16>
    %c0_12 = arith.constant 0 : index
    %c0_13 = arith.constant 0 : index
    %18 = vector.load %arg4[%c0_12, %c0_13] : memref<128x128xbf16, #tpu.memory_space<vmem>>, vector<128x128xbf16>
    %cst_14 = arith.constant dense<0.000000e+00> : vector<8x128xf32>
    %19 = tpu.matmul %17, %18, %cst_14 {dimension_numbers = #tpu.dot_dimension_numbers<[1], [0], [0], [1], [0, 0, 1, 1], [], []>} : vector<8x128xbf16>, vector<128x128xbf16>, vector<8x128xf32> -> vector<8x128xf32>
    %c0_15 = arith.constant 0 : index
    %c0_16 = arith.constant 0 : index
    %20 = vector.load %arg8[%c0_15, %c0_16] : memref<1x128xf32, #tpu.memory_space<vmem>>, vector<1x128xf32>
    %21 = vector.broadcast %20 : vector<1x128xf32> to vector<8x128xf32>
    %22 = arith.addf %19, %21 : vector<8x128xf32>
    %cst_17 = arith.constant 0.000000e+00 : f32
    %23 = vector.broadcast %cst_17 : f32 to vector<8x128xf32>
    %24 = arith.maximumf %22, %23 : vector<8x128xf32>
    %25 = arith.truncf %24 : vector<8x128xf32> to vector<8x128xbf16>
    %c0_18 = arith.constant 0 : index
    %c0_19 = arith.constant 0 : index
    %26 = vector.load %arg5[%c0_18, %c0_19] : memref<128x128xbf16, #tpu.memory_space<vmem>>, vector<128x128xbf16>
    %cst_20 = arith.constant dense<0.000000e+00> : vector<8x128xf32>
    %27 = tpu.matmul %25, %26, %cst_20 {dimension_numbers = #tpu.dot_dimension_numbers<[1], [0], [0], [1], [0, 0, 1, 1], [], []>} : vector<8x128xbf16>, vector<128x128xbf16>, vector<8x128xf32> -> vector<8x128xf32>
    %c0_21 = arith.constant 0 : index
    %c0_22 = arith.constant 0 : index
    %28 = vector.load %arg9[%c0_21, %c0_22] : memref<1x128xf32, #tpu.memory_space<vmem>>, vector<1x128xf32>
    %29 = vector.broadcast %28 : vector<1x128xf32> to vector<8x128xf32>
    %30 = arith.addf %27, %29 : vector<8x128xf32>
    %c0_23 = arith.constant 0 : index
    %c0_24 = arith.constant 0 : index
    %31 = vector.load %arg10[%c0_23, %c0_24] : memref<8x128xf32, #tpu.memory_space<vmem>>, vector<8x128xf32>
    tpu.vector_store %arg10[%c0_23, %c0_24], %30 {strides = array<i32>} : memref<8x128xf32, #tpu.memory_space<vmem>>, vector<8x128xf32>,
    return
  }
  func.func @transform_0(%arg0: i32) -> (i32, i32) {
    %c0_i32 = arith.constant 0 : i32
    %c0_i32_0 = arith.constant 0 : i32
    return %arg0, %c0_i32 : i32, i32
  }
  func.func @transform_1(%arg0: i32) -> (i32, i32) {
    %c0_i32 = arith.constant 0 : i32
    %c0_i32_0 = arith.constant 0 : i32
    %c0_i32_1 = arith.constant 0 : i32
    return %c0_i32, %c0_i32_0 : i32, i32
  }
  func.func @transform_2(%arg0: i32) -> (i32, i32) {
    %c0_i32 = arith.constant 0 : i32
    %c0_i32_0 = arith.constant 0 : i32
    %c0_i32_1 = arith.constant 0 : i32
    return %c0_i32, %c0_i32_0 : i32, i32
  }
  func.func @transform_3(%arg0: i32) -> (i32, i32) {
    %c0_i32 = arith.constant 0 : i32
    %c0_i32_0 = arith.constant 0 : i32
    %c0_i32_1 = arith.constant 0 : i32
    return %c0_i32, %c0_i32_0 : i32, i32
  }
  func.func @transform_4(%arg0: i32) -> (i32, i32) {
    %c0_i32 = arith.constant 0 : i32
    %c0_i32_0 = arith.constant 0 : i32
    %c0_i32_1 = arith.constant 0 : i32
    return %c0_i32, %c0_i32_0 : i32, i32
  }
  func.func @transform_5(%arg0: i32) -> (i32, i32) {
    %c0_i32 = arith.constant 0 : i32
    %c0_i32_0 = arith.constant 0 : i32
    %c0_i32_1 = arith.constant 0 : i32
    return %c0_i32, %c0_i32_0 : i32, i32
  }
  func.func @transform_6(%arg0: i32) -> (i32, i32) {
    %c0_i32 = arith.constant 0 : i32
    %c0_i32_0 = arith.constant 0 : i32
    %c0_i32_1 = arith.constant 0 : i32
    return %c0_i32, %c0_i32_0 : i32, i32
  }
  func.func @transform_7(%arg0: i32) -> (i32, i32) {
    %c0_i32 = arith.constant 0 : i32
    %c0_i32_0 = arith.constant 0 : i32
    %c0_i32_1 = arith.constant 0 : i32
    return %c0_i32, %c0_i32_0 : i32, i32
  }
  func.func @transform_8(%arg0: i32) -> (i32, i32) {
    %c0_i32 = arith.constant 0 : i32
    %c0_i32_0 = arith.constant 0 : i32
    %c0_i32_1 = arith.constant 0 : i32
    return %c0_i32, %c0_i32_0 : i32, i32
  }
  func.func @transform_9(%arg0: i32) -> (i32, i32) {
    %c0_i32 = arith.constant 0 : i32
    %c0_i32_0 = arith.constant 0 : i32
    return %arg0, %c0_i32 : i32, i32
  }
}

</mosaic_0001>

<bundles_post_ra>
// kernel: tpu_custom_call.1
= control target key start
LH: loop header
LB: loop body
LE: loop exit
PB: predicated region body
PF: predicated region fallthrough
CT: control target
= control target key end

     0   :  { %14 = vsyncpa [#allocation3], 0  ;;  %s1275_s0 = inlined_call_operand.hbm [shape: f32[8,32], index: 0, kind: input, shape index: {}]   ;;  %s1276_s1 = inlined_call_operand.hbm [shape: bf16[32,512], index: 1, kind: input, shape index: {}]   ;;  %s1277_s2 = inlined_call_operand.hbm [shape: bf16[512,128], index: 2, kind: input, shape index: {}]   ;;  %s1278_s3 = inlined_call_operand.hbm [shape: bf16[128,128], index: 3, kind: input, shape index: {}]   ;;  %s1279_s4 = inlined_call_operand.hbm [shape: bf16[128,128], index: 4, kind: input, shape index: {}]   ;;  %s1280_s5 = inlined_call_operand.vmem [shape: f32[1,512], index: 5, kind: input, shape index: {}]   ;;  %s1281_s6 = inlined_call_operand.vmem [shape: f32[1,128], index: 6, kind: input, shape index: {}]   ;;  %s1282_s7 = inlined_call_operand.vmem [shape: f32[1,128], index: 7, kind: input, shape index: {}]   ;;  %s1283_s8 = inlined_call_operand.vmem [shape: f32[1,128], index: 8, kind: input, shape index: {}]   ;;  %s1284_s9 = inlined_call_operand.hbm [shape: f32[8,128], index: 9, kind: output, shape index: {}]  }
   0x1   :  { %15 = vsyncpa [#allocation6], 0 }
   0x2   :  { %16 = vsyncpa [#allocation9], 0  ;;  %s33_s11 = sshll.u32 %s1276_s1, 4  ;;  %s34_s11 = int_to_ptr.hbm [resolvable:$true] %s33_s11 }
   0x3   :  { %17 = vsyncpa [#allocation4], 0  ;;  %s1181_s12 = smov [#allocation5]   ;;  %s1182_s14 = smov 256  }
   0x4   :  { %s35_s13 = sshll.u32 %s1181_s12, 4  ;;  %s1183_s15 = smov 16   ;;  %s36_s13 = int_to_ptr.vmem [resolvable:$true] %s35_s13 }
   0x5   :  { %41 = dma.hbm_to_vmem [thread:$0]  %s34_s11, 1024, %s36_s13, [#allocation6], %s1182_s14, %s1182_s14, %s1183_s15  }
   0x6   :  { %s59_s18 = sshll.u32 %s1278_s3, 4  ;;  %s1184_s19 = smov [#allocation8]   ;;  %s60_s18 = int_to_ptr.hbm [resolvable:$true] %s59_s18 }
   0x7   :  { %s61_s20 = sshll.u32 %s1184_s19, 4  ;;  %s23_s23 = sshll.u32 %s1275_s0, 4  ;;  %s62_s20 = int_to_ptr.vmem [resolvable:$true] %s61_s20  ;;  %s24_s23 = int_to_ptr.hbm [resolvable:$true] %s23_s23 }
   0x8   :  { %s1185_s1 = smov 64   ;;  %s1186_s24 = smov 4  }
   0x9   :  { %67 = dma.hbm_to_vmem [thread:$0]  %s60_s18, 1024, %s62_s20, [#allocation9], %s1185_s1, %s1185_s1, %s1186_s24  }
   0xa   :  { %s46_s27 = sshll.u32 %s1277_s2, 4  ;;  %s1187_s28 = smov [#allocation2]   ;;  %s47_s27 = int_to_ptr.hbm [resolvable:$true] %s46_s27 }
   0xb   :  { %s25_s29 = sshll.u32 %s1187_s28, 4  ;;  %s1188_s3 = smov [#allocation7]   ;;  %s26_s29 = int_to_ptr.vmem [resolvable:$true] %s25_s29 }
   0xc   :  { %28 = dma.hbm_to_vmem [thread:$0]  %s24_s23, 128, %s26_s29, [#allocation3]  }
   0xd   :  { %s48_s30 = sshll.u32 %s1188_s3, 4  ;;  %s72_s0 = sshll.u32 %s1279_s4, 4  ;;  %s49_s30 = int_to_ptr.vmem [resolvable:$true] %s48_s30  ;;  %s73_s0 = int_to_ptr.hbm [resolvable:$true] %s72_s0 }
   0xe   :  { %54 = dma.hbm_to_vmem [thread:$0]  %s47_s27, 4096, %s49_s30, [#allocation6], %s1185_s1, %s1185_s1, %s1186_s24  }
   0xf   :  { %s1189_s12 = smov [#allocation10]  }
  0x10   :  { %s74_s13 = sshll.u32 %s1189_s12, 4  ;;  %s75_s13 = int_to_ptr.vmem [resolvable:$true] %s74_s13 }
  0x11   :  { %80 = dma.hbm_to_vmem [thread:$0]  %s73_s0, 1024, %s75_s13, [#allocation9], %s1185_s1, %s1185_s1, %s1186_s24  }
  0x12   :  { %1173 = dma.done.wait [#allocation3], 128  }
  0x13   :  { %1174 = vsyncadd [#allocation3], 4294967168 }
  0x14   :  { %1175 = dma.done.wait [#allocation6], 5120  }
  0x15   :  { %1176 = vsyncadd [#allocation6], 4294962176 }
  0x16   :  { %1177 = dma.done.wait [#allocation9], 2048  }
  0x17   :  { %1178 = vsyncadd [#allocation9], 4294965248  ;;  %v750_v0 = vld [vmem:[#allocation5 + $0x20] sm:$0xf]  ;;  %v966_v1 = vld [vmem:[#allocation5 + $0x2c] sm:$0xf0] }
  0x18   :  { %v964_v2 = vld [vmem:[#allocation5 + $0x24] sm:$0xf]  ;;  %v751_v3 = vor.u32 %v966_v1, %v750_v0  ;;  %v752_v4 = vld [vmem:[#allocation5 + $0x30] sm:$0xf0]  ;;  %v734_v5 = vld [vmem:[#allocation5] sm:$0xf] }
  0x19   :  { %v962_v6 = vld [vmem:[#allocation5 + $0xc] sm:$0xf0]  ;;  %v755_v7 = vor.u32 %v964_v2, %v752_v4  ;;  %v960_v8 = vld [vmem:[#allocation5 + $0x4] sm:$0xf]  ;;  %v736_v9 = vld [vmem:[#allocation5 + $0x10] sm:$0xf0] }
  0x1a   :  { %v110_v10 = vld [vmem:[#allocation2] sm:$0xff]  ;;  %180 = vmatpush.bf16.msra.mxu2 %v751_v3  ;;  %v735_v11 = vor.u32 %v962_v6, %v734_v5  ;;  %v758_v12 = vld [vmem:[#allocation5 + $0x28] sm:$0xf]  ;;  %v965_v14 = vld [vmem:[#allocation5 + $0x2c] sm:$0xf]  ;;  %v739_v15 = vor.u32 %v960_v8, %v736_v9  ;;  %vm170_vm0 = vcmask 261120  }
  0x1b   :  { %v967_v13 = vld [vmem:[#allocation5 + $0x34] sm:$0xf0]  ;;  %193 = vmatpush.bf16.msra.mxu3 %v755_v7  ;;  %v760_v17 = vld [vmem:[#allocation5 + $0x38] sm:$0xf0]  ;;  %v742_v19 = vld [vmem:[#allocation5 + $0x8] sm:$0xf]  ;;  %v111_v22 = vpack.c.bf16 %v110_v10, %v110_v10 }
  0x1c   :  { %v759_v16 = vor.u32 %v967_v13, %v758_v12  ;;  %v763_v18 = vor.u32 %v965_v14, %v760_v17  ;;  %v963_v20 = vld [vmem:[#allocation5 + $0x14] sm:$0xf0]  ;;  %v961_v23 = vld [vmem:[#allocation5 + $0xc] sm:$0xf]  ;;  %v744_v24 = vld [vmem:[#allocation5 + $0x18] sm:$0xf0] }
  0x1d   :  { %v975_v21 = vld [vmem:[#allocation7 + $0x38] sm:$0xff]  ;;  %v974_v26 = vld [vmem:[#allocation7 + $0x30] sm:$0xff]  ;;  %v743_v27 = vor.u32 %v963_v20, %v742_v19  ;;  %v747_v28 = vor.u32 %v961_v23, %v744_v24  ;;  %v973_v32 = vld [vmem:[#allocation7 + $0x28] sm:$0xff]  ;;  %s1190_s18 = smov [#allocation11]   ;;  %s720_s22 = sshll.u32 %s1284_s9, 4  ;;  %s721_s22 = int_to_ptr.hbm [resolvable:$true] %s720_s22 }
  0x1e   :  { %v983_v25 = vld [vmem:[#allocation7 + $0x78] sm:$0xff]  ;;  %181 = vmatpush.bf16.msra.mxu2 %v735_v11  ;;  %494 = vmatpush.bf16.msra.mxu0 %v975_v21  ;;  %v982_v29 = vld [vmem:[#allocation7 + $0x70] sm:$0xff]  ;;  %v981_v33 = vld [vmem:[#allocation7 + $0x68] sm:$0xff]  ;;  %s718_s19 = sshll.u32 %s1190_s18, 4  ;;  %s719_s19 = int_to_ptr.vmem [resolvable:$true] %s718_s19 }
  0x1f   :  { %194 = vmatpush.bf16.msra.mxu3 %v739_v15  ;;  %507 = vmatpush.bf16.msra.mxu1 %v983_v25  ;;  %v991_v30 = vld [vmem:[#allocation7 + $0xb8] sm:$0xff]  ;;  %v990_v34 = vld [vmem:[#allocation7 + $0xb0] sm:$0xff]  ;;  %v972_v36 = vld [vmem:[#allocation7 + $0x20] sm:$0xff] }
  0x20   :  { %v999_v31 = vld [vmem:[#allocation7 + $0xf8] sm:$0xff]  ;;  %v998_v35 = vld [vmem:[#allocation7 + $0xf0] sm:$0xff]  ;;  %v980_v37 = vld [vmem:[#allocation7 + $0x60] sm:$0xff] }
  0x21   :  { %764 = vmatmul.msk.bf16.vlgmr.msra.gmra.mxu2 %vm170_vm0, %v111_v22  ;;  %v971_v38 = vld [vmem:[#allocation7 + $0x18] sm:$0xff]  ;;  %v970_v40 = vld [vmem:[#allocation7 + $0x10] sm:$0xff]  ;;  %v969_v42 = vld [vmem:[#allocation7 + $0x8] sm:$0xff] }
  0x22   :  { %206 = vmatpush.bf16.msrb.mxu2 %v759_v16  ;;  %765 = vmatmul.msk.bf16.vlgmr.msra.gmra.mxu3 %vm170_vm0, %v111_v22  ;;  %v979_v39 = vld [vmem:[#allocation7 + $0x58] sm:$0xff]  ;;  %v978_v41 = vld [vmem:[#allocation7 + $0x50] sm:$0xff]  ;;  %v977_v43 = vld [vmem:[#allocation7 + $0x48] sm:$0xff] }
  0x23   :  { %219 = vmatpush.bf16.msrb.mxu3 %v763_v18  ;;  %495 = vmatpush.bf16.msra.mxu0 %v974_v26  ;;  %v989_v44 = vld [vmem:[#allocation7 + $0xa8] sm:$0xff]  ;;  %v968_v46 = vld [vmem:[#allocation7] sm:$0xff]  ;;  %v987_v50 = vld [vmem:[#allocation7 + $0x98] sm:$0xff] }
  0x24   :  { %508 = vmatpush.bf16.msra.mxu1 %v982_v29  ;;  %v997_v45 = vld [vmem:[#allocation7 + $0xe8] sm:$0xff]  ;;  %v976_v47 = vld [vmem:[#allocation7 + $0x40] sm:$0xff]  ;;  %v995_v51 = vld [vmem:[#allocation7 + $0xd8] sm:$0xff] }
  0x25   :  { %v988_v48 = vld [vmem:[#allocation7 + $0xa0] sm:$0xff]  ;;  %v986_v52 = vld [vmem:[#allocation7 + $0x90] sm:$0xff]  ;;  %v985_v54 = vld [vmem:[#allocation7 + $0x88] sm:$0xff] }
  0x26   :  { %207 = vmatpush.bf16.msrb.mxu2 %v743_v27  ;;  %v996_v49 = vld [vmem:[#allocation7 + $0xe0] sm:$0xff]  ;;  %v994_v53 = vld [vmem:[#allocation7 + $0xd0] sm:$0xff]  ;;  %v993_v55 = vld [vmem:[#allocation7 + $0xc8] sm:$0xff] }
  0x27   :  { %220 = vmatpush.bf16.msrb.mxu3 %v747_v28  ;;  %496 = vmatpush.bf16.msra.mxu0 %v973_v32  ;;  %v984_v56 = vld [vmem:[#allocation7 + $0x80] sm:$0xff]  ;;  %v120_v58 = vld [vmem:[%s1280_s5] sm:$0xf]  ;;  %v1006_v20 = vld [vmem:[#allocation8 + $0x30] sm:$0xff] }
  0x28   :  { %509 = vmatpush.bf16.msra.mxu1 %v981_v33  ;;  %v992_v57 = vld [vmem:[#allocation7 + $0xc0] sm:$0xff]  ;;  %v122_v59 = vperm.slane %v120_v58, 0  ;;  %v123_v60 = vperm.slane %v120_v58, 1  ;;  %v124_v7 = vperm.slane %v120_v58, 2  ;;  %v125_v8 = vperm.slane %v120_v58, 3  ;;  %v1007_v19 = vld [vmem:[#allocation8 + $0x38] sm:$0xff] }
  0x29   :  { %v1005_v21 = vld [vmem:[#allocation8 + $0x28] sm:$0xff]  ;;  %v1003_v23 = vld [vmem:[#allocation8 + $0x18] sm:$0xff]  ;;  %v1002_v24 = vld [vmem:[#allocation8 + $0x10] sm:$0xff] }
  0x2a   :  { %520 = vmatpush.bf16.msra.mxu2 %v991_v30  ;;  %v1001_v25 = vld [vmem:[#allocation8 + $0x8] sm:$0xff]  ;;  %v1000_v26 = vld [vmem:[#allocation8] sm:$0xff]  ;;  %v1015_v27 = vld [vmem:[#allocation10 + $0x38] sm:$0xff] }
  0x2b   :  { %533 = vmatpush.bf16.msra.mxu3 %v999_v31  ;;  %497 = vmatpush.bf16.msra.mxu0 %v972_v36  ;;  %v1014_v30 = vld [vmem:[#allocation10 + $0x30] sm:$0xff]  ;;  %v1013_v31 = vld [vmem:[#allocation10 + $0x28] sm:$0xff]  ;;  %v1011_v36 = vld [vmem:[#allocation10 + $0x18] sm:$0xff] }
  0x2c   :  { %510 = vmatpush.bf16.msra.mxu1 %v980_v37 }
  0x2e   :  { %521 = vmatpush.bf16.msra.mxu2 %v990_v34  ;;  %v1012_v34 = vld [vmem:[#allocation10 + $0x20] sm:$0xff] }
  0x2f   :  { %534 = vmatpush.bf16.msra.mxu3 %v998_v35  ;;  %498 = vmatpush.bf16.msra.mxu0 %v971_v38  ;;  %v1026_v35 = vld [vmem:[%s1281_s6] ss:$0 sm:$0xff]  ;;  %v1010_v38 = vld [vmem:[#allocation10 + $0x10] sm:$0xff] }
  0x30   :  { %511 = vmatpush.bf16.msra.mxu1 %v979_v39 }
  0x31   :  { %766 = vmatmul.msk.bf16.vlgmr.msrb.gmra.mxu2 %vm170_vm0, %v111_v22 }
  0x32   :  { %767 = vmatmul.msk.bf16.vlgmr.msrb.gmra.mxu3 %vm170_vm0, %v111_v22  ;;  %522 = vmatpush.bf16.msra.mxu2 %v989_v44  ;;  %v1004_v22 = vld [vmem:[#allocation8 + $0x20] sm:$0xff] }
  0x33   :  { %499 = vmatpush.bf16.msra.mxu0 %v970_v40  ;;  %535 = vmatpush.bf16.msra.mxu3 %v997_v45 }
  0x34   :  { %512 = vmatpush.bf16.msra.mxu1 %v978_v41 }
  0x36   :  { %523 = vmatpush.bf16.msra.mxu2 %v988_v48  ;;  %v1009_v48 = vld [vmem:[#allocation10 + $0x8] sm:$0xff] }
  0x37   :  { %500 = vmatpush.bf16.msra.mxu0 %v969_v42  ;;  %536 = vmatpush.bf16.msra.mxu3 %v996_v49  ;;  %v1008_v49 = vld [vmem:[#allocation10] sm:$0xff] }
  0x38   :  { %513 = vmatpush.bf16.msra.mxu1 %v977_v43 }
  0x3a   :  { %524 = vmatpush.bf16.msra.mxu2 %v987_v50  ;;  %v1027_v50 = vld [vmem:[%s1282_s7] ss:$0 sm:$0xff] }
  0x3b   :  { %501 = vmatpush.bf16.msra.mxu0 %v968_v46  ;;  %537 = vmatpush.bf16.msra.mxu3 %v995_v51 }
  0x3c   :  { %514 = vmatpush.bf16.msra.mxu1 %v976_v47 }
  0x3e   :  { %525 = vmatpush.bf16.msra.mxu2 %v986_v52 }
  0x3f   :  { %538 = vmatpush.bf16.msra.mxu3 %v994_v53  ;;  %616 = vmatpush.bf16.msrb.mxu0 %v1007_v19 }
  0x40   :  { %699 = vmatpush.bf16.msrb.mxu1 %v1015_v27 }
  0x42   :  { %526 = vmatpush.bf16.msra.mxu2 %v985_v54 }
  0x43   :  { %539 = vmatpush.bf16.msra.mxu3 %v993_v55  ;;  %617 = vmatpush.bf16.msrb.mxu0 %v1006_v20 }
  0x44   :  { %700 = vmatpush.bf16.msrb.mxu1 %v1014_v30 }
  0x46   :  { %527 = vmatpush.bf16.msra.mxu2 %v984_v56  ;;  %v1028_v56 = vld [vmem:[%s1283_s8] ss:$0 sm:$0xff] }
  0x47   :  { %540 = vmatpush.bf16.msra.mxu3 %v992_v57  ;;  %618 = vmatpush.bf16.msrb.mxu0 %v1005_v21 }
  0x48   :  { %701 = vmatpush.bf16.msrb.mxu1 %v1013_v31 }
  0x4b   :  { %619 = vmatpush.bf16.msrb.mxu0 %v1004_v22 }
  0x4c   :  { %702 = vmatpush.bf16.msrb.mxu1 %v1012_v34 }
  0x4f   :  { %620 = vmatpush.bf16.msrb.mxu0 %v1003_v23 }
  0x50   :  { %703 = vmatpush.bf16.msrb.mxu1 %v1011_v36 }
  0x53   :  { %621 = vmatpush.bf16.msrb.mxu0 %v1002_v24 }
  0x54   :  { %704 = vmatpush.bf16.msrb.mxu1 %v1010_v38 }
  0x57   :  { %622 = vmatpush.bf16.msrb.mxu0 %v1001_v25 }
  0x58   :  { %705 = vmatpush.bf16.msrb.mxu1 %v1009_v48 }
  0x5b   :  { %623 = vmatpush.bf16.msrb.mxu0 %v1000_v26 }
  0x5c   :  { %706 = vmatpush.bf16.msrb.mxu1 %v1008_v49 }
  0xa4   :  { %v183_v61 = vpop.f32.mrf.mxu2 }
  0xa5   :  { %v184_v62 = vadd.f32 %v183_v61, %v122_v59  ;;  %v196_v63 = vpop.f32.mrf.mxu3 }
  0xa6   :  { %v197_v0 = vadd.f32 %v196_v63, %v123_v60 }
  0xa7   :  { %v226_v1 = vmax.f32 %v184_v62, 0.0 }
  0xa8   :  { %v227_v2 = vmax.f32 %v197_v0, 0.0 }
  0xa9   :  { %v230_v3 = vpack.c.bf16 %v226_v1, %v226_v1 }
  0xaa   :  { %v231_v4 = vpack.c.bf16 %v227_v2, %v227_v2 }
  0xab   :  { %502 = vmatmul.bf16.vlgmr.msra.gmra.mxu0 %v230_v3 }
  0xac   :  { %515 = vmatmul.bf16.vlgmr.msra.gmra.mxu1 %v231_v4  ;;  %v185_v5 = vpop.f32.mrf.mxu2 }
  0xad   :  { %v198_v6 = vpop.f32.mrf.mxu3 }
  0xb4   :  { %v209_v9 = vpop.f32.mrf.mxu2 }
  0xb5   :  { %v210_v10 = vadd.f32 %v209_v9, %v124_v7  ;;  %v222_v11 = vpop.f32.mrf.mxu3 }
  0xb6   :  { %v223_v12 = vadd.f32 %v222_v11, %v125_v8 }
  0xb7   :  { %v228_v13 = vmax.f32 %v210_v10, 0.0 }
  0xb8   :  { %v229_v14 = vmax.f32 %v223_v12, 0.0 }
  0xb9   :  { %v232_v15 = vpack.c.bf16 %v228_v13, %v228_v13 }
  0xba   :  { %v233_v16 = vpack.c.bf16 %v229_v14, %v229_v14 }
  0xbb   :  { %528 = vmatmul.bf16.vlgmr.msra.gmra.mxu2 %v232_v15 }
  0xbc   :  { %541 = vmatmul.bf16.vlgmr.msra.gmra.mxu3 %v233_v16  ;;  %v211_v17 = vpop.f32.mrf.mxu2 }
  0xbd   :  { %v224_v18 = vpop.f32.mrf.mxu3 }
 0x128   :  { %v503_v28 = vpop.f32.mrf.mxu0 }
 0x129   :  { %v516_v29 = vpop.f32.mrf.mxu1  ;;  %v504_v37 = vadd.f32 %v1026_v35, %v503_v28 }
 0x12b   :  { %v517_v39 = vadd.f32 %v516_v29, %v504_v37 }
 0x130   :  { %v505_v32 = vpop.f32.mrf.mxu0 }
 0x131   :  { %v518_v33 = vpop.f32.mrf.mxu1 }
 0x13e   :  { %v529_v40 = vpop.f32.mrf.mxu2 }
 0x13f   :  { %v530_v41 = vadd.f32 %v529_v40, %v517_v39  ;;  %v542_v42 = vpop.f32.mrf.mxu3 }
 0x141   :  { %v543_v43 = vadd.f32 %v542_v42, %v530_v41 }
 0x143   :  { %v546_v44 = vmax.f32 %v543_v43, 0.0 }
 0x145   :  { %v547_v45 = vpack.c.bf16 %v546_v44, %v546_v44 }
 0x146   :  { %v531_v46 = vpop.f32.mrf.mxu2 }
 0x147   :  { %v544_v47 = vpop.f32.mrf.mxu3  ;;  %624 = vmatmul.bf16.vlgmr.msrb.gmra.mxu0 %v547_v45 }
 0x1c4   :  { %v625_v51 = vpop.f32.mrf.mxu0 }
 0x1c5   :  { %v626_v52 = vadd.f32 %v1027_v50, %v625_v51 }
 0x1c7   :  { %v629_v53 = vmax.f32 %v626_v52, 0.0 }
 0x1c9   :  { %v630_v54 = vpack.c.bf16 %v629_v53, %v629_v53 }
 0x1cb   :  { %707 = vmatmul.bf16.vlgmr.msrb.gmra.mxu1 %v630_v54 }
 0x1cc   :  { %v627_v55 = vpop.f32.mrf.mxu0 }
 0x248   :  { %v708_v57 = vpop.f32.mrf.mxu1 }
 0x249   :  { %v709_v58 = vadd.f32 %v1028_v56, %v708_v57 }
 0x24b   :  { %712 = vst [vmem:[#allocation11] sm:$0xff] %v709_v58 }
 0x24c   :  { %723 = dma.vmem_to_hbm [thread:$0]  %s719_s19, 128, %s721_s22, [#allocation4]  }
 0x250   :  { %v710_v59 = vpop.f32.mrf.mxu1 }
 0x251   :  { %1179 = dma.done.wait [#allocation4], 128  }
 0x252   :  { %1180 = vsyncadd [#allocation4], 4294967168 }
 0x253   :  { %728 = vsyncpa [#allocation3], 1 }
 0x254   :  { %729 = vsyncpa [#allocation6], 1 }
 0x255   :  { %730 = vsyncpa [#allocation9], 1 }
 0x256   :  { %731 = vsyncpa [#allocation4], 1 }

</bundles_post_ra>
